<compile_context>
chip_gen: v6e
topology: v6e:2x2x1
jax: 0.10.0
libtpu: 0.0.40
codegen_flags: <defaults>
</compile_context>

<pallas_src>
import functools

import jax
import jax.numpy as jnp
from jax.experimental import pallas as pl
from jax.experimental.pallas import tpu as pltpu


def _round_up(v, m):
    return (v + m - 1) // m * m


def _lstm_mean_kernel(x_ref, wih_ref, whh_ref, bias_ref, out_ref,
                      gx_ref, h_ref, c_ref, acc_ref,
                      *, hidden_size, batch_pad, t_chunk, seq_len):
    """One grid step processes a chunk of t_chunk timesteps.

    x_ref   : (t_chunk*Bp, I)  compute dtype, time-major rows (row = t*Bp + b)
    wih_ref : (I, 4H)          compute dtype (transposed weight_ih_l0)
    whh_ref : (H, 4H)          compute dtype (transposed weight_hh_l0)
    bias_ref: (1, 4H)          f32 (bias_ih_l0 + bias_hh_l0)
    out_ref : (Bp, H)          f32, mean over time of hidden states
    gx_ref  : (t_chunk*Bp, 4H) f32 scratch — hoisted input projection
    h/c/acc : (Bp, H)          f32 scratch — persistent across grid steps
    """
    H = hidden_size
    G = 4 * H
    Bp = batch_pad
    Tc = t_chunk
    chunk = pl.program_id(0)

    @pl.when(chunk == 0)
    def _init():
        h_ref[...] = jnp.zeros_like(h_ref)
        c_ref[...] = jnp.zeros_like(c_ref)
        acc_ref[...] = jnp.zeros_like(acc_ref)

    # ---- Hoisted input projection + bias for the whole chunk (one MXU call).
    gx_ref[...] = (
        jnp.dot(x_ref[...], wih_ref[...], preferred_element_type=jnp.float32)
        + bias_ref[...]
    )

    whh = whh_ref[...]                       # (H, 4H), resident
    cdt = whh.dtype

    # Lane mask, hoisted: tanh for the 'g' gate lanes [2H, 3H), sigmoid else.
    lane = jax.lax.broadcasted_iota(jnp.int32, (Bp, G), 1)
    is_g = jnp.logical_and(lane >= 2 * H, lane < 3 * H)

    needs_mask = (seq_len % t_chunk) != 0    # static python condition

    def step(t, carry):
        h, c, acc = carry
        row = pl.multiple_of(t * Bp, Bp)
        z = gx_ref[pl.ds(row, Bp), :] + jnp.dot(
            h.astype(cdt), whh, preferred_element_type=jnp.float32)  # (Bp, 4H)
        # Full-vreg EUP passes blended by the precomputed lane mask.
        act = jnp.where(is_g, jnp.tanh(z), jax.nn.sigmoid(z))
        i_g = act[:, 0 * H:1 * H]
        f_g = act[:, 1 * H:2 * H]
        g_g = act[:, 2 * H:3 * H]
        o_g = act[:, 3 * H:4 * H]
        c_new = f_g * c + i_g * g_g
        h_new = o_g * jnp.tanh(c_new)
        if needs_mask:
            # Only emitted when T does not divide into chunks: ignore the
            # zero-padded tail timesteps.
            m = (chunk * t_chunk + t < seq_len).astype(jnp.float32)
            h_new = m * h_new + (1.0 - m) * h
            c_new = m * c_new + (1.0 - m) * c
            acc = acc + m * h_new
        else:
            acc = acc + h_new
        return h_new, c_new, acc

    unroll = Tc if Tc <= 16 else 8
    h, c, acc = jax.lax.fori_loop(
        0, Tc, step, (h_ref[...], c_ref[...], acc_ref[...]), unroll=unroll)
    h_ref[...] = h
    c_ref[...] = c
    acc_ref[...] = acc

    @pl.when(chunk == pl.num_programs(0) - 1)
    def _finalize():
        out_ref[...] = acc * (1.0 / seq_len)


def lstm_model_forward(x, params, *, compute_dtype=jnp.bfloat16, t_chunk=None):
    """x: (B, T, input_size) float32, batch_first like the PyTorch module."""
    B, T, I = x.shape
    if B == 1:
        # TODO(synk): the B==1 branch applies fc to out[:, -1, -1] (a length-1
        # vector); it is only shape-valid in PyTorch when hidden_size == 1, so
        # it is not implemented here.
        raise NotImplementedError("B == 1 branch not supported")

    w_ih, w_hh = params["w_ih"], params["w_hh"]
    b_ih, b_hh = params["b_ih"], params["b_hh"]
    H = w_hh.shape[1]
    G = 4 * H

    Bp = _round_up(B, 8)                      # full sublane groups
    if t_chunk is None:
        t_chunk = min(T, 32)
    num_chunks = pl.cdiv(T, t_chunk)
    Tp = num_chunks * t_chunk

    # Time-major, batch/time padded with zeros, flattened to (Tp*Bp, I) so each
    # grid step streams a lane/sublane-clean 2-D slab (row index = t*Bp + b).
    x_tbi = jnp.transpose(x, (1, 0, 2)).astype(compute_dtype)     # (T, B, I)
    x_tbi = jnp.pad(x_tbi, ((0, Tp - T), (0, Bp - B), (0, 0)))
    x_flat = x_tbi.reshape(Tp * Bp, I)

    wih_t = jnp.transpose(w_ih).astype(compute_dtype)             # (I, 4H)
    whh_t = jnp.transpose(w_hh).astype(compute_dtype)             # (H, 4H)
    bias = (b_ih + b_hh).reshape(1, G).astype(jnp.float32)        # (1, 4H)

    kernel = functools.partial(
        _lstm_mean_kernel, hidden_size=H, batch_pad=Bp,
        t_chunk=t_chunk, seq_len=T)

    # VMEM budget: double-buffered blocks + scratch, with headroom; capped at
    # 64 MiB so it is safe on v7x (and trivially on v5e/v6e).
    cdt_bytes = jnp.dtype(compute_dtype).itemsize
    x_blk = t_chunk * Bp * I * cdt_bytes
    w_bytes = (I * G + H * G) * cdt_bytes
    io_bytes = G * 4 + Bp * H * 4
    scratch_bytes = (t_chunk * Bp * G + 3 * Bp * H) * 4
    need = 2 * (x_blk + w_bytes + io_bytes) + scratch_bytes
    vmem_limit = int(min(max(2 * need + (1 << 20), 16 * 2**20), 64 * 2**20))

    cost = pl.CostEstimate(
        flops=int(2 * T * Bp * (I + H) * G),
        transcendentals=int(5 * T * Bp * H),
        bytes_accessed=int(x_flat.size * cdt_bytes + (I + H) * G * cdt_bytes
                           + G * 4 + Bp * H * 4),
    )

    out = pl.pallas_call(
        kernel,
        out_shape=jax.ShapeDtypeStruct((Bp, H), jnp.float32),
        grid_spec=pltpu.PrefetchScalarGridSpec(
            num_scalar_prefetch=0,
            grid=(num_chunks,),
            in_specs=[
                pl.BlockSpec((t_chunk * Bp, I), lambda t: (t, 0)),   # x chunk
                pl.BlockSpec((I, G), lambda t: (0, 0)),              # W_ih^T
                pl.BlockSpec((H, G), lambda t: (0, 0)),              # W_hh^T
                pl.BlockSpec((1, G), lambda t: (0, 0)),              # bias
            ],
            out_specs=pl.BlockSpec((Bp, H), lambda t: (0, 0)),
            scratch_shapes=[
                pltpu.VMEM((t_chunk * Bp, G), jnp.float32),   # hoisted gates_x
                pltpu.VMEM((Bp, H), jnp.float32),             # h
                pltpu.VMEM((Bp, H), jnp.float32),             # c
                pltpu.VMEM((Bp, H), jnp.float32),             # sum_t h_t
            ],
        ),
        compiler_params=pltpu.CompilerParams(
            dimension_semantics=("arbitrary",),
            vmem_limit_bytes=vmem_limit,
        ),
        cost_estimate=cost,
    )(x_flat, wih_t, whh_t, bias)
    return out[:B]   # (B, H) — fc is intentionally not applied in this branch


def _reference_forward(x, params):
    """Pure-JAX f32 reference mirroring torch.nn.LSTM(batch_first=True)."""
    w_ih, w_hh, b_ih, b_hh = (
        params["w_ih"], params["w_hh"], params["b_ih"], params["b_hh"])
    B, T, _ = x.shape
    H = w_hh.shape[1]
    h = jnp.zeros((B, H), jnp.float32)
    c = jnp.zeros((B, H), jnp.float32)
    hs = []
    for t in range(T):
        gates = x[:, t, :] @ w_ih.T + h @ w_hh.T + b_ih + b_hh
        i_g = jax.nn.sigmoid(gates[:, 0 * H:1 * H])
        f_g = jax.nn.sigmoid(gates[:, 1 * H:2 * H])
        g_g = jnp.tanh(gates[:, 2 * H:3 * H])
        o_g = jax.nn.sigmoid(gates[:, 3 * H:4 * H])
        c = f_g * c + i_g * g_g
        h = o_g * jnp.tanh(c)
        hs.append(h)
    out = jnp.stack(hs, axis=1)       # (B, T, H)
    return jnp.mean(out, axis=1)      # (B, H)


def init_params(key, input_size, hidden_size, output_size):
    """Deterministic init matching PyTorch shapes (uniform ±1/sqrt(H))."""
    ks = jax.random.split(key, 6)
    bound = 1.0 / jnp.sqrt(hidden_size)
    u = lambda k, shape: jax.random.uniform(
        k, shape, jnp.float32, minval=-bound, maxval=bound)
    return {
        "w_ih": u(ks[0], (4 * hidden_size, input_size)),
        "w_hh": u(ks[1], (4 * hidden_size, hidden_size)),
        "b_ih": u(ks[2], (4 * hidden_size,)),
        "b_hh": u(ks[3], (4 * hidden_size,)),
        "fc_w": u(ks[4], (output_size, hidden_size)),
        "fc_b": u(ks[5], (output_size,)),
    }


if __name__ == "__main__":
    B, T, INPUT, HIDDEN, OUTPUT = 2, 8, 8, 32, 4

    key = jax.random.PRNGKey(0)
    k_x, k_p = jax.random.split(key)
    x = jax.random.normal(k_x, (B, T, INPUT), jnp.float32)
    params = init_params(k_p, INPUT, HIDDEN, OUTPUT)

    ref = _reference_forward(x, params)

    # 1) f32 compute path: numerically faithful to the reference recurrence.
    out_f32 = jax.block_until_ready(
        lstm_model_forward(x, params, compute_dtype=jnp.float32))
    assert out_f32.shape == (B, HIDDEN)
    assert jnp.allclose(out_f32, ref, atol=1e-4, rtol=1e-4), "f32 mismatch"

    # 2) bf16 MXU path (default): f32 accumulation, looser tolerance vs f32 ref.
    out_bf16 = jax.block_until_ready(lstm_model_forward(x, params))
    assert out_bf16.shape == (B, HIDDEN)
    assert jnp.allclose(out_bf16, ref, atol=5e-2, rtol=5e-2), "bf16 mismatch"

    # 3) Multi-chunk streaming path with a non-dividing chunk (tail masking).
    out_chunked = jax.block_until_ready(
        lstm_model_forward(x, params, t_chunk=3))
    assert jnp.allclose(out_chunked, out_bf16, atol=1e-4, rtol=1e-4), \
        "chunked-vs-monolithic mismatch"

    print("KERNEL_OK")
</pallas_src>

<mosaic_0001>
module attributes {stable_mosaic.version = 11 : i64} {
  func.func @_lstm_mean_kernel(%arg0: i32, %arg1: memref<64x8xf32, #tpu.memory_space<vmem>>, %arg2: memref<8x128xf32, #tpu.memory_space<vmem>>, %arg3: memref<32x128xf32, #tpu.memory_space<vmem>>, %arg4: memref<1x128xf32, #tpu.memory_space<vmem>>, %arg5: memref<8x32xf32, #tpu.memory_space<vmem>>, %arg6: memref<64x128xf32, #tpu.memory_space<vmem>>, %arg7: memref<8x32xf32, #tpu.memory_space<vmem>>, %arg8: memref<8x32xf32, #tpu.memory_space<vmem>>, %arg9: memref<8x32xf32, #tpu.memory_space<vmem>>) attributes {dimension_semantics = [#tpu.dimension_semantics<arbitrary>], iteration_bounds = array<i64: 1>, scalar_prefetch = 0 : i64, scratch_operands = 4 : i64, tpu.core_type = #tpu.core_type<tc>, window_params = [{transform_indices = @transform_0, window_bounds = array<i64: 64, 8>}, {pipeline_mode = #tpu.pipeline_mode<synchronous>, transform_indices = @transform_1, window_bounds = array<i64: 8, 128>}, {pipeline_mode = #tpu.pipeline_mode<synchronous>, transform_indices = @transform_2, window_bounds = array<i64: 32, 128>}, {pipeline_mode = #tpu.pipeline_mode<synchronous>, transform_indices = @transform_3, window_bounds = array<i64: 1, 128>}, {pipeline_mode = #tpu.pipeline_mode<synchronous>, transform_indices = @transform_4, window_bounds = array<i64: 8, 32>}]} {
    %c0_i32 = arith.constant 0 : i32
    %0 = arith.cmpi eq, %arg0, %c0_i32 : i32
    %1 = arith.extui %0 : i1 to i32
    %c0_i32_0 = arith.constant 0 : i32
    %2 = arith.cmpi ne, %1, %c0_i32_0 : i32
    scf.if %2 {
      %cst_57 = arith.constant 0.000000e+00 : f32
      %210 = vector.broadcast %cst_57 : f32 to vector<8x32xf32>
      %c0_58 = arith.constant 0 : index
      %c0_59 = arith.constant 0 : index
      %211 = vector.load %arg7[%c0_58, %c0_59] : memref<8x32xf32, #tpu.memory_space<vmem>>, vector<8x32xf32>
      tpu.vector_store %arg7[%c0_58, %c0_59], %210 {strides = array<i32>} : memref<8x32xf32, #tpu.memory_space<vmem>>, vector<8x32xf32>,
      %cst_60 = arith.constant 0.000000e+00 : f32
      %212 = vector.broadcast %cst_60 : f32 to vector<8x32xf32>
      %c0_61 = arith.constant 0 : index
      %c0_62 = arith.constant 0 : index
      %213 = vector.load %arg8[%c0_61, %c0_62] : memref<8x32xf32, #tpu.memory_space<vmem>>, vector<8x32xf32>
      tpu.vector_store %arg8[%c0_61, %c0_62], %212 {strides = array<i32>} : memref<8x32xf32, #tpu.memory_space<vmem>>, vector<8x32xf32>,
      %cst_63 = arith.constant 0.000000e+00 : f32
      %214 = vector.broadcast %cst_63 : f32 to vector<8x32xf32>
      %c0_64 = arith.constant 0 : index
      %c0_65 = arith.constant 0 : index
      %215 = vector.load %arg9[%c0_64, %c0_65] : memref<8x32xf32, #tpu.memory_space<vmem>>, vector<8x32xf32>
      tpu.vector_store %arg9[%c0_64, %c0_65], %214 {strides = array<i32>} : memref<8x32xf32, #tpu.memory_space<vmem>>, vector<8x32xf32>,
    } else {
    }
    %c0 = arith.constant 0 : index
    %c0_1 = arith.constant 0 : index
    %3 = vector.load %arg1[%c0, %c0_1] : memref<64x8xf32, #tpu.memory_space<vmem>>, vector<64x8xf32>
    %c0_2 = arith.constant 0 : index
    %c0_3 = arith.constant 0 : index
    %4 = vector.load %arg2[%c0_2, %c0_3] : memref<8x128xf32, #tpu.memory_space<vmem>>, vector<8x128xf32>
    %cst = arith.constant dense<0.000000e+00> : vector<64x128xf32>
    %5 = tpu.matmul %3, %4, %cst {dimension_numbers = #tpu.dot_dimension_numbers<[1], [0], [0], [1], [0, 0, 1, 1], [], []>} : vector<64x8xf32>, vector<8x128xf32>, vector<64x128xf32> -> vector<64x128xf32>
    %c0_4 = arith.constant 0 : index
    %c0_5 = arith.constant 0 : index
    %6 = vector.load %arg4[%c0_4, %c0_5] : memref<1x128xf32, #tpu.memory_space<vmem>>, vector<1x128xf32>
    %7 = vector.broadcast %6 : vector<1x128xf32> to vector<64x128xf32>
    %8 = arith.addf %5, %7 : vector<64x128xf32>
    %c0_6 = arith.constant 0 : index
    %c0_7 = arith.constant 0 : index
    %9 = vector.load %arg6[%c0_6, %c0_7] : memref<64x128xf32, #tpu.memory_space<vmem>>, vector<64x128xf32>
    tpu.vector_store %arg6[%c0_6, %c0_7], %8 {strides = array<i32>} : memref<64x128xf32, #tpu.memory_space<vmem>>, vector<64x128xf32>,
    %c0_8 = arith.constant 0 : index
    %c0_9 = arith.constant 0 : index
    %10 = vector.load %arg3[%c0_8, %c0_9] : memref<32x128xf32, #tpu.memory_space<vmem>>, vector<32x128xf32>
    %11 = tpu.iota {dimensions = array<i32: 1>} : vector<8x128xi32>
    %c64_i32 = arith.constant 64 : i32
    %12 = vector.broadcast %c64_i32 : i32 to vector<8x128xi32>
    %13 = arith.cmpi sge, %11, %12 : vector<8x128xi32>
    %c96_i32 = arith.constant 96 : i32
    %14 = vector.broadcast %c96_i32 : i32 to vector<8x128xi32>
    %15 = arith.cmpi slt, %11, %14 : vector<8x128xi32>
    %16 = arith.andi %13, %15 : vector<8x128xi1>
    %c0_10 = arith.constant 0 : index
    %c0_11 = arith.constant 0 : index
    %17 = vector.load %arg7[%c0_10, %c0_11] : memref<8x32xf32, #tpu.memory_space<vmem>>, vector<8x32xf32>
    %c0_12 = arith.constant 0 : index
    %c0_13 = arith.constant 0 : index
    %18 = vector.load %arg8[%c0_12, %c0_13] : memref<8x32xf32, #tpu.memory_space<vmem>>, vector<8x32xf32>
    %c0_14 = arith.constant 0 : index
    %c0_15 = arith.constant 0 : index
    %19 = vector.load %arg9[%c0_14, %c0_15] : memref<8x32xf32, #tpu.memory_space<vmem>>, vector<8x32xf32>
    %c0_i32_16 = arith.constant 0 : i32
    %c8_i32 = arith.constant 8 : i32
    %20 = arith.muli %c0_i32_16, %c8_i32 : i32
    %21 = tpu.assume_multiple %20, 8 : i32
    %22 = arith.index_cast %21 : i32 to index
    %c0_17 = arith.constant 0 : index
    %23 = vector.load %arg6[%22, %c0_17] : memref<64x128xf32, #tpu.memory_space<vmem>>, vector<8x128xf32>
    %cst_18 = arith.constant dense<0.000000e+00> : vector<8x128xf32>
    %24 = tpu.matmul %17, %10, %cst_18 {dimension_numbers = #tpu.dot_dimension_numbers<[1], [0], [0], [1], [0, 0, 1, 1], [], []>} : vector<8x32xf32>, vector<32x128xf32>, vector<8x128xf32> -> vector<8x128xf32>
    %25 = arith.addf %23, %24 : vector<8x128xf32>
    %26 = math.tanh %25 : vector<8x128xf32>
    %27 = arith.negf %25 : vector<8x128xf32>
    %28 = math.exp %27 : vector<8x128xf32>
    %cst_19 = arith.constant 1.000000e+00 : f32
    %29 = vector.broadcast %cst_19 : f32 to vector<8x128xf32>
    %30 = arith.addf %29, %28 : vector<8x128xf32>
    %31 = arith.divf %29, %30 : vector<8x128xf32>
    %32 = arith.select %16, %26, %31 : vector<8x128xi1>, vector<8x128xf32>
    %33 = vector.extract_strided_slice %32 {offsets = [0, 0], sizes = [8, 32], strides = [1, 1]} : vector<8x128xf32> to vector<8x32xf32>
    %34 = vector.extract_strided_slice %32 {offsets = [0, 32], sizes = [8, 32], strides = [1, 1]} : vector<8x128xf32> to vector<8x32xf32>
    %35 = vector.extract_strided_slice %32 {offsets = [0, 64], sizes = [8, 32], strides = [1, 1]} : vector<8x128xf32> to vector<8x32xf32>
    %36 = vector.extract_strided_slice %32 {offsets = [0, 96], sizes = [8, 32], strides = [1, 1]} : vector<8x128xf32> to vector<8x32xf32>
    %37 = arith.mulf %34, %18 : vector<8x32xf32>
    %38 = arith.mulf %33, %35 : vector<8x32xf32>
    %39 = arith.addf %37, %38 : vector<8x32xf32>
    %40 = math.tanh %39 : vector<8x32xf32>
    %41 = arith.mulf %36, %40 : vector<8x32xf32>
    %42 = arith.addf %19, %41 : vector<8x32xf32>
    %c1_i32 = arith.constant 1 : i32
    %c8_i32_20 = arith.constant 8 : i32
    %43 = arith.muli %c1_i32, %c8_i32_20 : i32
    %44 = tpu.assume_multiple %43, 8 : i32
    %45 = arith.index_cast %44 : i32 to index
    %c0_21 = arith.constant 0 : index
    %46 = vector.load %arg6[%45, %c0_21] : memref<64x128xf32, #tpu.memory_space<vmem>>, vector<8x128xf32>
    %cst_22 = arith.constant dense<0.000000e+00> : vector<8x128xf32>
    %47 = tpu.matmul %41, %10, %cst_22 {dimension_numbers = #tpu.dot_dimension_numbers<[1], [0], [0], [1], [0, 0, 1, 1], [], []>} : vector<8x32xf32>, vector<32x128xf32>, vector<8x128xf32> -> vector<8x128xf32>
    %48 = arith.addf %46, %47 : vector<8x128xf32>
    %49 = math.tanh %48 : vector<8x128xf32>
    %50 = arith.negf %48 : vector<8x128xf32>
    %51 = math.exp %50 : vector<8x128xf32>
    %cst_23 = arith.constant 1.000000e+00 : f32
    %52 = vector.broadcast %cst_23 : f32 to vector<8x128xf32>
    %53 = arith.addf %52, %51 : vector<8x128xf32>
    %54 = arith.divf %52, %53 : vector<8x128xf32>
    %55 = arith.select %16, %49, %54 : vector<8x128xi1>, vector<8x128xf32>
    %56 = vector.extract_strided_slice %55 {offsets = [0, 0], sizes = [8, 32], strides = [1, 1]} : vector<8x128xf32> to vector<8x32xf32>
    %57 = vector.extract_strided_slice %55 {offsets = [0, 32], sizes = [8, 32], strides = [1, 1]} : vector<8x128xf32> to vector<8x32xf32>
    %58 = vector.extract_strided_slice %55 {offsets = [0, 64], sizes = [8, 32], strides = [1, 1]} : vector<8x128xf32> to vector<8x32xf32>
    %59 = vector.extract_strided_slice %55 {offsets = [0, 96], sizes = [8, 32], strides = [1, 1]} : vector<8x128xf32> to vector<8x32xf32>
    %60 = arith.mulf %57, %39 : vector<8x32xf32>
    %61 = arith.mulf %56, %58 : vector<8x32xf32>
    %62 = arith.addf %60, %61 : vector<8x32xf32>
    %63 = math.tanh %62 : vector<8x32xf32>
    %64 = arith.mulf %59, %63 : vector<8x32xf32>
    %65 = arith.addf %42, %64 : vector<8x32xf32>
    %c2_i32 = arith.constant 2 : i32
    %c8_i32_24 = arith.constant 8 : i32
    %66 = arith.muli %c2_i32, %c8_i32_24 : i32
    %67 = tpu.assume_multiple %66, 8 : i32
    %68 = arith.index_cast %67 : i32 to index
    %c0_25 = arith.constant 0 : index
    %69 = vector.load %arg6[%68, %c0_25] : memref<64x128xf32, #tpu.memory_space<vmem>>, vector<8x128xf32>
    %cst_26 = arith.constant dense<0.000000e+00> : vector<8x128xf32>
    %70 = tpu.matmul %64, %10, %cst_26 {dimension_numbers = #tpu.dot_dimension_numbers<[1], [0], [0], [1], [0, 0, 1, 1], [], []>} : vector<8x32xf32>, vector<32x128xf32>, vector<8x128xf32> -> vector<8x128xf32>
    %71 = arith.addf %69, %70 : vector<8x128xf32>
    %72 = math.tanh %71 : vector<8x128xf32>
    %73 = arith.negf %71 : vector<8x128xf32>
    %74 = math.exp %73 : vector<8x128xf32>
    %cst_27 = arith.constant 1.000000e+00 : f32
    %75 = vector.broadcast %cst_27 : f32 to vector<8x128xf32>
    %76 = arith.addf %75, %74 : vector<8x128xf32>
    %77 = arith.divf %75, %76 : vector<8x128xf32>
    %78 = arith.select %16, %72, %77 : vector<8x128xi1>, vector<8x128xf32>
    %79 = vector.extract_strided_slice %78 {offsets = [0, 0], sizes = [8, 32], strides = [1, 1]} : vector<8x128xf32> to vector<8x32xf32>
    %80 = vector.extract_strided_slice %78 {offsets = [0, 32], sizes = [8, 32], strides = [1, 1]} : vector<8x128xf32> to vector<8x32xf32>
    %81 = vector.extract_strided_slice %78 {offsets = [0, 64], sizes = [8, 32], strides = [1, 1]} : vector<8x128xf32> to vector<8x32xf32>
    %82 = vector.extract_strided_slice %78 {offsets = [0, 96], sizes = [8, 32], strides = [1, 1]} : vector<8x128xf32> to vector<8x32xf32>
    %83 = arith.mulf %80, %62 : vector<8x32xf32>
    %84 = arith.mulf %79, %81 : vector<8x32xf32>
    %85 = arith.addf %83, %84 : vector<8x32xf32>
    %86 = math.tanh %85 : vector<8x32xf32>
    %87 = arith.mulf %82, %86 : vector<8x32xf32>
    %88 = arith.addf %65, %87 : vector<8x32xf32>
    %c3_i32 = arith.constant 3 : i32
    %c8_i32_28 = arith.constant 8 : i32
    %89 = arith.muli %c3_i32, %c8_i32_28 : i32
    %90 = tpu.assume_multiple %89, 8 : i32
    %91 = arith.index_cast %90 : i32 to index
    %c0_29 = arith.constant 0 : index
    %92 = vector.load %arg6[%91, %c0_29] : memref<64x128xf32, #tpu.memory_space<vmem>>, vector<8x128xf32>
    %cst_30 = arith.constant dense<0.000000e+00> : vector<8x128xf32>
    %93 = tpu.matmul %87, %10, %cst_30 {dimension_numbers = #tpu.dot_dimension_numbers<[1], [0], [0], [1], [0, 0, 1, 1], [], []>} : vector<8x32xf32>, vector<32x128xf32>, vector<8x128xf32> -> vector<8x128xf32>
    %94 = arith.addf %92, %93 : vector<8x128xf32>
    %95 = math.tanh %94 : vector<8x128xf32>
    %96 = arith.negf %94 : vector<8x128xf32>
    %97 = math.exp %96 : vector<8x128xf32>
    %cst_31 = arith.constant 1.000000e+00 : f32
    %98 = vector.broadcast %cst_31 : f32 to vector<8x128xf32>
    %99 = arith.addf %98, %97 : vector<8x128xf32>
    %100 = arith.divf %98, %99 : vector<8x128xf32>
    %101 = arith.select %16, %95, %100 : vector<8x128xi1>, vector<8x128xf32>
    %102 = vector.extract_strided_slice %101 {offsets = [0, 0], sizes = [8, 32], strides = [1, 1]} : vector<8x128xf32> to vector<8x32xf32>
    %103 = vector.extract_strided_slice %101 {offsets = [0, 32], sizes = [8, 32], strides = [1, 1]} : vector<8x128xf32> to vector<8x32xf32>
    %104 = vector.extract_strided_slice %101 {offsets = [0, 64], sizes = [8, 32], strides = [1, 1]} : vector<8x128xf32> to vector<8x32xf32>
    %105 = vector.extract_strided_slice %101 {offsets = [0, 96], sizes = [8, 32], strides = [1, 1]} : vector<8x128xf32> to vector<8x32xf32>
    %106 = arith.mulf %103, %85 : vector<8x32xf32>
    %107 = arith.mulf %102, %104 : vector<8x32xf32>
    %108 = arith.addf %106, %107 : vector<8x32xf32>
    %109 = math.tanh %108 : vector<8x32xf32>
    %110 = arith.mulf %105, %109 : vector<8x32xf32>
    %111 = arith.addf %88, %110 : vector<8x32xf32>
    %c4_i32 = arith.constant 4 : i32
    %c8_i32_32 = arith.constant 8 : i32
    %112 = arith.muli %c4_i32, %c8_i32_32 : i32
    %113 = tpu.assume_multiple %112, 8 : i32
    %114 = arith.index_cast %113 : i32 to index
    %c0_33 = arith.constant 0 : index
    %115 = vector.load %arg6[%114, %c0_33] : memref<64x128xf32, #tpu.memory_space<vmem>>, vector<8x128xf32>
    %cst_34 = arith.constant dense<0.000000e+00> : vector<8x128xf32>
    %116 = tpu.matmul %110, %10, %cst_34 {dimension_numbers = #tpu.dot_dimension_numbers<[1], [0], [0], [1], [0, 0, 1, 1], [], []>} : vector<8x32xf32>, vector<32x128xf32>, vector<8x128xf32> -> vector<8x128xf32>
    %117 = arith.addf %115, %116 : vector<8x128xf32>
    %118 = math.tanh %117 : vector<8x128xf32>
    %119 = arith.negf %117 : vector<8x128xf32>
    %120 = math.exp %119 : vector<8x128xf32>
    %cst_35 = arith.constant 1.000000e+00 : f32
    %121 = vector.broadcast %cst_35 : f32 to vector<8x128xf32>
    %122 = arith.addf %121, %120 : vector<8x128xf32>
    %123 = arith.divf %121, %122 : vector<8x128xf32>
    %124 = arith.select %16, %118, %123 : vector<8x128xi1>, vector<8x128xf32>
    %125 = vector.extract_strided_slice %124 {offsets = [0, 0], sizes = [8, 32], strides = [1, 1]} : vector<8x128xf32> to vector<8x32xf32>
    %126 = vector.extract_strided_slice %124 {offsets = [0, 32], sizes = [8, 32], strides = [1, 1]} : vector<8x128xf32> to vector<8x32xf32>
    %127 = vector.extract_strided_slice %124 {offsets = [0, 64], sizes = [8, 32], strides = [1, 1]} : vector<8x128xf32> to vector<8x32xf32>
    %128 = vector.extract_strided_slice %124 {offsets = [0, 96], sizes = [8, 32], strides = [1, 1]} : vector<8x128xf32> to vector<8x32xf32>
    %129 = arith.mulf %126, %108 : vector<8x32xf32>
    %130 = arith.mulf %125, %127 : vector<8x32xf32>
    %131 = arith.addf %129, %130 : vector<8x32xf32>
    %132 = math.tanh %131 : vector<8x32xf32>
    %133 = arith.mulf %128, %132 : vector<8x32xf32>
    %134 = arith.addf %111, %133 : vector<8x32xf32>
    %c5_i32 = arith.constant 5 : i32
    %c8_i32_36 = arith.constant 8 : i32
    %135 = arith.muli %c5_i32, %c8_i32_36 : i32
    %136 = tpu.assume_multiple %135, 8 : i32
    %137 = arith.index_cast %136 : i32 to index
    %c0_37 = arith.constant 0 : index
    %138 = vector.load %arg6[%137, %c0_37] : memref<64x128xf32, #tpu.memory_space<vmem>>, vector<8x128xf32>
    %cst_38 = arith.constant dense<0.000000e+00> : vector<8x128xf32>
    %139 = tpu.matmul %133, %10, %cst_38 {dimension_numbers = #tpu.dot_dimension_numbers<[1], [0], [0], [1], [0, 0, 1, 1], [], []>} : vector<8x32xf32>, vector<32x128xf32>, vector<8x128xf32> -> vector<8x128xf32>
    %140 = arith.addf %138, %139 : vector<8x128xf32>
    %141 = math.tanh %140 : vector<8x128xf32>
    %142 = arith.negf %140 : vector<8x128xf32>
    %143 = math.exp %142 : vector<8x128xf32>
    %cst_39 = arith.constant 1.000000e+00 : f32
    %144 = vector.broadcast %cst_39 : f32 to vector<8x128xf32>
    %145 = arith.addf %144, %143 : vector<8x128xf32>
    %146 = arith.divf %144, %145 : vector<8x128xf32>
    %147 = arith.select %16, %141, %146 : vector<8x128xi1>, vector<8x128xf32>
    %148 = vector.extract_strided_slice %147 {offsets = [0, 0], sizes = [8, 32], strides = [1, 1]} : vector<8x128xf32> to vector<8x32xf32>
    %149 = vector.extract_strided_slice %147 {offsets = [0, 32], sizes = [8, 32], strides = [1, 1]} : vector<8x128xf32> to vector<8x32xf32>
    %150 = vector.extract_strided_slice %147 {offsets = [0, 64], sizes = [8, 32], strides = [1, 1]} : vector<8x128xf32> to vector<8x32xf32>
    %151 = vector.extract_strided_slice %147 {offsets = [0, 96], sizes = [8, 32], strides = [1, 1]} : vector<8x128xf32> to vector<8x32xf32>
    %152 = arith.mulf %149, %131 : vector<8x32xf32>
    %153 = arith.mulf %148, %150 : vector<8x32xf32>
    %154 = arith.addf %152, %153 : vector<8x32xf32>
    %155 = math.tanh %154 : vector<8x32xf32>
    %156 = arith.mulf %151, %155 : vector<8x32xf32>
    %157 = arith.addf %134, %156 : vector<8x32xf32>
    %c6_i32 = arith.constant 6 : i32
    %c8_i32_40 = arith.constant 8 : i32
    %158 = arith.muli %c6_i32, %c8_i32_40 : i32
    %159 = tpu.assume_multiple %158, 8 : i32
    %160 = arith.index_cast %159 : i32 to index
    %c0_41 = arith.constant 0 : index
    %161 = vector.load %arg6[%160, %c0_41] : memref<64x128xf32, #tpu.memory_space<vmem>>, vector<8x128xf32>
    %cst_42 = arith.constant dense<0.000000e+00> : vector<8x128xf32>
    %162 = tpu.matmul %156, %10, %cst_42 {dimension_numbers = #tpu.dot_dimension_numbers<[1], [0], [0], [1], [0, 0, 1, 1], [], []>} : vector<8x32xf32>, vector<32x128xf32>, vector<8x128xf32> -> vector<8x128xf32>
    %163 = arith.addf %161, %162 : vector<8x128xf32>
    %164 = math.tanh %163 : vector<8x128xf32>
    %165 = arith.negf %163 : vector<8x128xf32>
    %166 = math.exp %165 : vector<8x128xf32>
    %cst_43 = arith.constant 1.000000e+00 : f32
    %167 = vector.broadcast %cst_43 : f32 to vector<8x128xf32>
    %168 = arith.addf %167, %166 : vector<8x128xf32>
    %169 = arith.divf %167, %168 : vector<8x128xf32>
    %170 = arith.select %16, %164, %169 : vector<8x128xi1>, vector<8x128xf32>
    %171 = vector.extract_strided_slice %170 {offsets = [0, 0], sizes = [8, 32], strides = [1, 1]} : vector<8x128xf32> to vector<8x32xf32>
    %172 = vector.extract_strided_slice %170 {offsets = [0, 32], sizes = [8, 32], strides = [1, 1]} : vector<8x128xf32> to vector<8x32xf32>
    %173 = vector.extract_strided_slice %170 {offsets = [0, 64], sizes = [8, 32], strides = [1, 1]} : vector<8x128xf32> to vector<8x32xf32>
    %174 = vector.extract_strided_slice %170 {offsets = [0, 96], sizes = [8, 32], strides = [1, 1]} : vector<8x128xf32> to vector<8x32xf32>
    %175 = arith.mulf %172, %154 : vector<8x32xf32>
    %176 = arith.mulf %171, %173 : vector<8x32xf32>
    %177 = arith.addf %175, %176 : vector<8x32xf32>
    %178 = math.tanh %177 : vector<8x32xf32>
    %179 = arith.mulf %174, %178 : vector<8x32xf32>
    %180 = arith.addf %157, %179 : vector<8x32xf32>
    %c7_i32 = arith.constant 7 : i32
    %c8_i32_44 = arith.constant 8 : i32
    %181 = arith.muli %c7_i32, %c8_i32_44 : i32
    %182 = tpu.assume_multiple %181, 8 : i32
    %183 = arith.index_cast %182 : i32 to index
    %c0_45 = arith.constant 0 : index
    %184 = vector.load %arg6[%183, %c0_45] : memref<64x128xf32, #tpu.memory_space<vmem>>, vector<8x128xf32>
    %cst_46 = arith.constant dense<0.000000e+00> : vector<8x128xf32>
    %185 = tpu.matmul %179, %10, %cst_46 {dimension_numbers = #tpu.dot_dimension_numbers<[1], [0], [0], [1], [0, 0, 1, 1], [], []>} : vector<8x32xf32>, vector<32x128xf32>, vector<8x128xf32> -> vector<8x128xf32>
    %186 = arith.addf %184, %185 : vector<8x128xf32>
    %187 = math.tanh %186 : vector<8x128xf32>
    %188 = arith.negf %186 : vector<8x128xf32>
    %189 = math.exp %188 : vector<8x128xf32>
    %cst_47 = arith.constant 1.000000e+00 : f32
    %190 = vector.broadcast %cst_47 : f32 to vector<8x128xf32>
    %191 = arith.addf %190, %189 : vector<8x128xf32>
    %192 = arith.divf %190, %191 : vector<8x128xf32>
    %193 = arith.select %16, %187, %192 : vector<8x128xi1>, vector<8x128xf32>
    %194 = vector.extract_strided_slice %193 {offsets = [0, 0], sizes = [8, 32], strides = [1, 1]} : vector<8x128xf32> to vector<8x32xf32>
    %195 = vector.extract_strided_slice %193 {offsets = [0, 32], sizes = [8, 32], strides = [1, 1]} : vector<8x128xf32> to vector<8x32xf32>
    %196 = vector.extract_strided_slice %193 {offsets = [0, 64], sizes = [8, 32], strides = [1, 1]} : vector<8x128xf32> to vector<8x32xf32>
    %197 = vector.extract_strided_slice %193 {offsets = [0, 96], sizes = [8, 32], strides = [1, 1]} : vector<8x128xf32> to vector<8x32xf32>
    %198 = arith.mulf %195, %177 : vector<8x32xf32>
    %199 = arith.mulf %194, %196 : vector<8x32xf32>
    %200 = arith.addf %198, %199 : vector<8x32xf32>
    %201 = math.tanh %200 : vector<8x32xf32>
    %202 = arith.mulf %197, %201 : vector<8x32xf32>
    %203 = arith.addf %180, %202 : vector<8x32xf32>
    %c8_i32_48 = arith.constant 8 : i32
    %c0_49 = arith.constant 0 : index
    %c0_50 = arith.constant 0 : index
    %204 = vector.load %arg7[%c0_49, %c0_50] : memref<8x32xf32, #tpu.memory_space<vmem>>, vector<8x32xf32>
    tpu.vector_store %arg7[%c0_49, %c0_50], %202 {strides = array<i32>} : memref<8x32xf32, #tpu.memory_space<vmem>>, vector<8x32xf32>,
    %c0_51 = arith.constant 0 : index
    %c0_52 = arith.constant 0 : index
    %205 = vector.load %arg8[%c0_51, %c0_52] : memref<8x32xf32, #tpu.memory_space<vmem>>, vector<8x32xf32>
    tpu.vector_store %arg8[%c0_51, %c0_52], %200 {strides = array<i32>} : memref<8x32xf32, #tpu.memory_space<vmem>>, vector<8x32xf32>,
    %c0_53 = arith.constant 0 : index
    %c0_54 = arith.constant 0 : index
    %206 = vector.load %arg9[%c0_53, %c0_54] : memref<8x32xf32, #tpu.memory_space<vmem>>, vector<8x32xf32>
    tpu.vector_store %arg9[%c0_53, %c0_54], %203 {strides = array<i32>} : memref<8x32xf32, #tpu.memory_space<vmem>>, vector<8x32xf32>,
    %c0_i32_55 = arith.constant 0 : i32
    %207 = arith.cmpi eq, %arg0, %c0_i32_55 : i32
    %208 = arith.extui %207 : i1 to i32
    %c0_i32_56 = arith.constant 0 : i32
    %209 = arith.cmpi ne, %208, %c0_i32_56 : i32
    scf.if %209 {
      %cst_57 = arith.constant 1.250000e-01 : f32
      %210 = vector.broadcast %cst_57 : f32 to vector<8x32xf32>
      %211 = arith.mulf %203, %210 : vector<8x32xf32>
      %c0_58 = arith.constant 0 : index
      %c0_59 = arith.constant 0 : index
      %212 = vector.load %arg5[%c0_58, %c0_59] : memref<8x32xf32, #tpu.memory_space<vmem>>, vector<8x32xf32>
      tpu.vector_store %arg5[%c0_58, %c0_59], %211 {strides = array<i32>} : memref<8x32xf32, #tpu.memory_space<vmem>>, vector<8x32xf32>,
    } else {
    }
    return
  }
  func.func @transform_0(%arg0: i32) -> (i32, i32) {
    %c0_i32 = arith.constant 0 : i32
    %c0_i32_0 = arith.constant 0 : i32
    return %arg0, %c0_i32 : i32, i32
  }
  func.func @transform_1(%arg0: i32) -> (i32, i32) {
    %c0_i32 = arith.constant 0 : i32
    %c0_i32_0 = arith.constant 0 : i32
    %c0_i32_1 = arith.constant 0 : i32
    return %c0_i32, %c0_i32_0 : i32, i32
  }
  func.func @transform_2(%arg0: i32) -> (i32, i32) {
    %c0_i32 = arith.constant 0 : i32
    %c0_i32_0 = arith.constant 0 : i32
    %c0_i32_1 = arith.constant 0 : i32
    return %c0_i32, %c0_i32_0 : i32, i32
  }
  func.func @transform_3(%arg0: i32) -> (i32, i32) {
    %c0_i32 = arith.constant 0 : i32
    %c0_i32_0 = arith.constant 0 : i32
    %c0_i32_1 = arith.constant 0 : i32
    return %c0_i32, %c0_i32_0 : i32, i32
  }
  func.func @transform_4(%arg0: i32) -> (i32, i32) {
    %c0_i32 = arith.constant 0 : i32
    %c0_i32_0 = arith.constant 0 : i32
    %c0_i32_1 = arith.constant 0 : i32
    return %c0_i32, %c0_i32_0 : i32, i32
  }
}

</mosaic_0001>

<bundles_post_ra>
// kernel: tpu_custom_call.1
= control target key start
LH: loop header
LB: loop body
LE: loop exit
PB: predicated region body
PF: predicated region fallthrough
CT: control target
= control target key end

     0   :  { %vm42_vm0 = vcmask 64512   ;;  %v1331_v3 = vmov 0.0   ;;  %vm22_vm1 = vcmask 261120   ;;  %s1620_s0 = inlined_call_operand.vmem [shape: f32[64,8], index: 0, kind: input, shape index: {}]   ;;  %s1621_s1 = inlined_call_operand.vmem [shape: f32[8,128], index: 1, kind: input, shape index: {}]   ;;  %s1622_s2 = inlined_call_operand.vmem [shape: f32[32,128], index: 2, kind: input, shape index: {}]   ;;  %s1623_s3 = inlined_call_operand.vmem [shape: f32[1,128], index: 3, kind: input, shape index: {}]   ;;  %s1624_s4 = inlined_call_operand.hbm [shape: f32[8,32], index: 4, kind: output, shape index: {}]  }
   0x1   :  { %v34_v0 = vld [vmem:[%s1621_s1] sm:$0xff]  ;;  %v1371_v2 = vld [vmem:[%s1622_s2 + $0x18] sm:$0xff]  ;;  %1151 = vmatprep.subr.mxu1 %v1331_v3  ;;  %v27_v4 = vld [vmem:[%s1620_s0 + $0x8] sm:$0xff]  ;;  %23 = vst.msk [vmem:[#allocation3] sm:$0xff] %vm22_vm1, %v1331_v3 }
   0x2   :  { %v26_v1 = vld [vmem:[%s1620_s0] sm:$0xff]  ;;  %1137 = vmatprep.subr.mxu0 %v34_v0  ;;  %v1381_v5 = vld [vmem:[%s1622_s2 + $0x10] sm:$0xff]  ;;  %24 = vst.msk [vmem:[#allocation4] sm:$0xff] %vm22_vm1, %v1331_v3  ;;  %25 = vst.msk [vmem:[#allocation5] sm:$0xff] %vm22_vm1, %v1331_v3 }
   0x3   :  { %1138 = vmatpush3.msra.mxu0 %v34_v0  ;;  %1139 = vmatprep.mubr.msk.f32.mxu0 %vm42_vm0, %v26_v1 }
   0x4   :  { %9 = vsyncpa [#allocation7], 0  ;;  %1152 = vmatpush3.msra.mxu1 %v1371_v2  ;;  %1140 = vmatmul.mubr.msk.f32.vlgmr.msra.gmra.mxu0 %vm42_vm0, %v27_v4  ;;  %v1395_v6 = vld [vmem:[%s1622_s2 + $0x8] sm:$0xff]  ;;  %vm1332_vm2 = vmmov 0   ;;  %v1405_v7 = vld [vmem:[%s1622_s2] sm:$0xff]  ;;  %v184_v19 = vlaneseq  ;;  %s1334_s29 = smov 32  }
   0x5   :  { %1153 = vmatprep.subr.mxu1 %v1331_v3  ;;  %1159 = vmatprep.mubr.msk.f32.mxu1 %vm1332_vm2, %v1331_v3  ;;  %v1433_v10 = vld [vmem:[%s1623_s3] ss:$0 sm:$0xff]  ;;  %s1333_s3 = smov 64   ;;  %v28_v51 = vld [vmem:[%s1620_s0 + $0x10] sm:$0xff]  ;;  %v29_v52 = vld [vmem:[%s1620_s0 + $0x18] sm:$0xff]  ;;  %s1336_s16 = smov [#allocation6]  }
   0x6   :  { %1154 = vmatpush3.msra.mxu1 %v1381_v5  ;;  %1173 = vmatprep.subr.mxu0 %v1331_v3  ;;  %v185_v20 = vand.u32 127, %v184_v19  ;;  %v30_v53 = vld [vmem:[%s1620_s0 + $0x20] sm:$0xff]  ;;  %v31_v54 = vld [vmem:[%s1620_s0 + $0x28] sm:$0xff]  ;;  %v32_v55 = vld [vmem:[%s1620_s0 + $0x30] sm:$0xff]  ;;  %s1055_s17 = sshll.u32 %s1336_s16, 4  ;;  %s1056_s17 = int_to_ptr.vmem [resolvable:$true] %s1055_s17 }
   0x7   :  { %1155 = vmatprep.subr.mxu1 %v1331_v3  ;;  %1174 = vmatpush3.msra.mxu0 %v1371_v2  ;;  %v33_v56 = vld [vmem:[%s1620_s0 + $0x38] sm:$0xff]  ;;  %s1335_s0 = smov 96   ;;  %s1309_s18 = scalar_lea.vmem %s1056_s17, 128 }
   0x8   :  { %1156 = vmatpush3.msra.mxu1 %v1395_v6  ;;  %1175 = vmatprep.subr.mxu0 %v1331_v3  ;;  %v189_v8 = vld [vmem:[#allocation3] sm:$0xff]  ;;  %vm186_vm3 = vcmp.ge.s32.totalorder %v185_v20, 64  ;;  %vm187_vm4 = vcmp.lt.s32.totalorder %v185_v20, 96  ;;  %p1310_p0 = scmp.ne.s32.totalorder %s1056_s17, %s1309_s18  ;;  %p1314_p1 = scmp.lt.s32.totalorder %s1056_s17, %s1056_s17 }
   0x9   :  { %1157 = vmatprep.subr.mxu1 %v1331_v3  ;;  %1176 = vmatpush3.msra.mxu0 %v1381_v5  ;;  %vm1436_vm5 = vmand %vm186_vm3, %vm187_vm4  ;;  %v190_v25 = vld [vmem:[#allocation4] sm:$0xff]  ;;  %p1315_p2 = scmp.lt.s32.totalorder %s1309_s18, %s1309_s18 }
   0xa   :  { %1158 = vmatpush3.msra.mxu1 %v1405_v7  ;;  %1177 = vmatprep.subr.mxu0 %v1331_v3 }
   0xb   :  { %1160 = vmatmul.mubr.msk.f32.vlgmr.msra.gmra.mxu1 %vm22_vm1, %v189_v8  ;;  %1162 = vmatprep.subr.mxu1 %v1331_v3  ;;  %p1316_p3 = por %p1315_p2, %p1314_p1 }
   0xc   :  { %1163 = vmatpush3.msra.mxu1 %v1371_v2  ;;  %1170 = vmatprep.mubr.msk.f32.mxu1 %vm1332_vm2, %v1331_v3 }
   0xd   :  { %1164 = vmatprep.subr.mxu1 %v1331_v3  ;;  %1178 = vmatpush3.msra.mxu0 %v1395_v6  ;;  %p1317_p4 = pnand %p1316_p3, %p1310_p0 }
   0xe   :  { %1165 = vmatpush3.msra.mxu1 %v1381_v5  ;;  %1179 = vmatprep.subr.mxu0 %v1331_v3 }
   0xf   :  { %1166 = vmatprep.subr.mxu1 %v1331_v3  ;;  %1180 = vmatpush3.msra.mxu0 %v1405_v7 }
  0x10   :  { %1167 = vmatpush3.msra.mxu1 %v1395_v6  ;;  %1195 = vmatprep.subr.mxu0 %v1331_v3 }
  0x11   :  { %1168 = vmatprep.subr.mxu1 %v1331_v3  ;;  %1142 = vmatprep.mubr.msk.f32.mxu0 %vm42_vm0, %v28_v51 }
  0x12   :  { %1169 = vmatpush3.msra.mxu1 %v1405_v7  ;;  %1143 = vmatmul.mubr.msk.f32.gmra.mxu0 %vm42_vm0, %v29_v52 }
  0x13   :  { %1184 = vmatprep.subr.mxu1 %v1331_v3  ;;  %1145 = vmatprep.mubr.msk.f32.mxu0 %vm42_vm0, %v30_v53 }
  0x16   :  { %1146 = vmatmul.mubr.msk.f32.gmra.mxu0 %vm42_vm0, %v31_v54 }
  0x17   :  { %1148 = vmatprep.mubr.msk.f32.mxu0 %vm42_vm0, %v32_v55 }
  0x1a   :  { %1149 = vmatmul.mubr.msk.f32.gmra.mxu0 %vm42_vm0, %v33_v56 }
  0x1b   :  { %1181 = vmatprep.mubr.msk.f32.mxu0 %vm1332_vm2, %v1331_v3 }
  0xc4   :  { %v1141_v9 = vpop.f32.mrf.mxu0 }
  0xc5   :  { %v139_v36 = vadd.f32 %v1141_v9, %v1433_v10 }
  0xc6   :  { %v133_v11 = vpop.f32.mrf.mxu0 }
  0xc7   :  { %v134_v12 = vadd.f32 %v1433_v10, %v133_v11 }
  0xcb   :  { %v263_v13 = vpop.f32.mrf.mxu1 }
  0xcc   :  { %v267_v14 = vadd.f32 %v263_v13, %v134_v12 }
  0xcd   :  { %v1161_v15 = vpop.f32.mrf.mxu1 }
  0xce   :  { %v1073_v16 = vmul.f32 -1.442695, %v267_v14 }
  0xd0   :  { %1245 = vpow2.f32 %v1073_v16 }
  0xd1   :  { %1247 = vtanh.f32 %v267_v14 }
  0xd2   :  { %v1144_v61 = vpop.f32.mrf.mxu0 }
  0xd4   :  { %v143_v62 = vpop.f32.mrf.mxu0 }
  0xd5   :  { %v144_v8 = vadd.f32 %v1433_v10, %v143_v62 }
  0xd6   :  { %v1508_v63 = vpop.f32.mrf.mxu0 }
  0xd8   :  { %v1510_v0 = vpop.f32.mrf.mxu0 }
  0xda   :  { %v1512_v1 = vpop.f32.mrf.mxu0 }
  0xdc   :  { %v1514_v4 = vpop.f32.mrf.mxu0 }
  0xdd   :  { %v1246_v17 = vpop.eup %1245 }
  0xde   :  { %v272_v18 = vadd.f32 1.0, %v1246_v17  ;;  %v1248_v22 = vpop.eup %1247 }
  0xe0   :  { %1249 = vrcp.f32 %v272_v18 }
  0xed   :  { %v1250_v23 = vpop.eup %1249 }
  0xee   :  { %v275_v24 = vsel %vm1436_vm5, %v1248_v22, %v1250_v23 }
  0xef   :  { %282 = vrot.lane.b32.xlu0 %v275_v24, %s1333_s3 }
  0xf3   :  { %277 = vrot.lane.b32.xlu0 %v190_v25, %s1334_s29 }
 0x161   :  { %v283_v26 = vpop.permute.xlu0 %282 }
 0x162   :  { %v285_v27 = vmul.f32 %v283_v26, %v275_v24 }
 0x164   :  { %287 = vrot.lane.b32.xlu1 %v285_v27, %s1334_s29 }
 0x165   :  { %v278_v28 = vpop.permute.xlu0 %277 }
 0x166   :  { %v280_v29 = vmul.f32 %v278_v28, %v275_v24 }
 0x1d6   :  { %v288_v30 = vpop.permute.xlu1 %287 }
 0x1d7   :  { %v290_v31 = vadd.f32 %v288_v30, %v280_v29  ;;  %v149_v29 = vadd.f32 %v1144_v61, %v1433_v10 }
 0x1d9   :  { %1251 = vtanh.f32 %v290_v31 }
 0x1e6   :  { %v1252_v32 = vpop.eup %1251 }
 0x1e7   :  { %293 = vrot.lane.b32.xlu1 %v1252_v32, %s1333_s3 }
 0x259   :  { %v294_v33 = vpop.permute.xlu1 %293 }
 0x25a   :  { %v296_v34 = vmul.f32 %v294_v33, %v275_v24 }
 0x25c   :  { %298 = vrot.lane.b32.xlu0 %v296_v34, %s1334_s29 }
 0x2ce   :  { %v1447_v35 = vpop.permute.xlu0 %298 }
 0x2cf   :  { %1171 = vmatmul.mubr.msk.f32.vlgmr.msra.gmra.mxu1 %vm22_vm1, %v1447_v35 }
 0x2d0   :  { %1185 = vmatpush3.msra.mxu1 %v1371_v2  ;;  %1192 = vmatprep.mubr.msk.f32.mxu1 %vm1332_vm2, %v1331_v3 }
 0x2d1   :  { %1186 = vmatprep.subr.mxu1 %v1331_v3 }
 0x2d2   :  { %1187 = vmatpush3.msra.mxu1 %v1381_v5 }
 0x2d3   :  { %1188 = vmatprep.subr.mxu1 %v1331_v3 }
 0x2d4   :  { %1189 = vmatpush3.msra.mxu1 %v1395_v6 }
 0x2d5   :  { %1190 = vmatprep.subr.mxu1 %v1331_v3 }
 0x2d6   :  { %1191 = vmatpush3.msra.mxu1 %v1405_v7 }
 0x2d7   :  { %1206 = vmatprep.subr.mxu1 %v1331_v3 }
 0x38f   :  { %v372_v37 = vpop.f32.mrf.mxu1 }
 0x390   :  { %v376_v38 = vadd.f32 %v372_v37, %v139_v36 }
 0x391   :  { %v1172_v39 = vpop.f32.mrf.mxu1 }
 0x392   :  { %v1075_v40 = vmul.f32 -1.442695, %v376_v38 }
 0x394   :  { %1253 = vpow2.f32 %v1075_v40 }
 0x395   :  { %1255 = vtanh.f32 %v376_v38 }
 0x3a1   :  { %v1254_v41 = vpop.eup %1253 }
 0x3a2   :  { %v381_v42 = vadd.f32 1.0, %v1254_v41  ;;  %v1256_v43 = vpop.eup %1255 }
 0x3a4   :  { %1257 = vrcp.f32 %v381_v42 }
 0x3b1   :  { %v1258_v44 = vpop.eup %1257 }
 0x3b2   :  { %v384_v45 = vsel %vm1436_vm5, %v1256_v43, %v1258_v44 }
 0x3b3   :  { %387 = vrot.lane.b32.xlu1 %v384_v45, %s1333_s3  ;;  %v385_v48 = vmul.f32 %v384_v45, %v290_v31 }
 0x425   :  { %v388_v46 = vpop.permute.xlu1 %387 }
 0x426   :  { %v390_v47 = vmul.f32 %v388_v46, %v384_v45 }
 0x428   :  { %392 = vrot.lane.b32.xlu0 %v390_v47, %s1334_s29 }
 0x49a   :  { %v393_v49 = vpop.permute.xlu0 %392 }
 0x49b   :  { %v395_v50 = vadd.f32 %v393_v49, %v385_v48  ;;  %v154_v49 = vadd.f32 %v1433_v10, %v1510_v0 }
 0x49d   :  { %1259 = vtanh.f32 %v395_v50 }
 0x4aa   :  { %v1260_v57 = vpop.eup %1259 }
 0x4ab   :  { %398 = vrot.lane.b32.xlu1 %v1260_v57, %s1333_s3 }
 0x51d   :  { %v399_v58 = vpop.permute.xlu1 %398 }
 0x51e   :  { %v401_v59 = vmul.f32 %v399_v58, %v384_v45 }
 0x520   :  { %403 = vrot.lane.b32.xlu0 %v401_v59, %s1334_s29 }
 0x592   :  { %v1494_v60 = vpop.permute.xlu0 %403 }
 0x593   :  { %1182 = vmatmul.mubr.msk.f32.vlgmr.msra.gmra.mxu0 %vm22_vm1, %v1494_v60 }
 0x594   :  { %1196 = vmatpush3.msra.mxu0 %v1371_v2  ;;  %1203 = vmatprep.mubr.msk.f32.mxu0 %vm1332_vm2, %v1331_v3 }
 0x595   :  { %1197 = vmatprep.subr.mxu0 %v1331_v3 }
 0x596   :  { %1198 = vmatpush3.msra.mxu0 %v1381_v5 }
 0x597   :  { %1199 = vmatprep.subr.mxu0 %v1331_v3 }
 0x598   :  { %1200 = vmatpush3.msra.mxu0 %v1395_v6 }
 0x599   :  { %1201 = vmatprep.subr.mxu0 %v1331_v3 }
 0x59a   :  { %1202 = vmatpush3.msra.mxu0 %v1405_v7 }
 0x59b   :  { %1217 = vmatprep.subr.mxu0 %v1331_v3 }
 0x653   :  { %v477_v9 = vpop.f32.mrf.mxu0 }
 0x654   :  { %v481_v11 = vadd.f32 %v477_v9, %v144_v8 }
 0x655   :  { %v1183_v12 = vpop.f32.mrf.mxu0 }
 0x656   :  { %v1077_v13 = vmul.f32 -1.442695, %v481_v11 }
 0x658   :  { %1261 = vpow2.f32 %v1077_v13 }
 0x659   :  { %1263 = vtanh.f32 %v481_v11 }
 0x665   :  { %v1262_v14 = vpop.eup %1261 }
 0x666   :  { %v486_v15 = vadd.f32 1.0, %v1262_v14  ;;  %v1264_v16 = vpop.eup %1263  ;;  %v159_v14 = vadd.f32 %v1508_v63, %v1433_v10 }
 0x668   :  { %1265 = vrcp.f32 %v486_v15 }
 0x675   :  { %v1266_v17 = vpop.eup %1265 }
 0x676   :  { %v489_v18 = vsel %vm1436_vm5, %v1264_v16, %v1266_v17 }
 0x677   :  { %492 = vrot.lane.b32.xlu1 %v489_v18, %s1333_s3  ;;  %v490_v22 = vmul.f32 %v489_v18, %v395_v50 }
 0x6e9   :  { %v493_v19 = vpop.permute.xlu1 %492 }
 0x6ea   :  { %v495_v20 = vmul.f32 %v493_v19, %v489_v18 }
 0x6ec   :  { %497 = vrot.lane.b32.xlu0 %v495_v20, %s1334_s29 }
 0x75e   :  { %v498_v23 = vpop.permute.xlu0 %497 }
 0x75f   :  { %v500_v24 = vadd.f32 %v498_v23, %v490_v22 }
 0x761   :  { %1267 = vtanh.f32 %v500_v24 }
 0x76e   :  { %v1268_v25 = vpop.eup %1267 }
 0x76f   :  { %503 = vrot.lane.b32.xlu1 %v1268_v25, %s1333_s3 }
 0x7e1   :  { %v504_v26 = vpop.permute.xlu1 %503 }
 0x7e2   :  { %v506_v27 = vmul.f32 %v504_v26, %v489_v18 }
 0x7e4   :  { %508 = vrot.lane.b32.xlu0 %v506_v27, %s1334_s29 }
 0x856   :  { %v1523_v28 = vpop.permute.xlu0 %508 }
 0x857   :  { %1193 = vmatmul.mubr.msk.f32.vlgmr.msra.gmra.mxu1 %vm22_vm1, %v1523_v28 }
 0x858   :  { %1207 = vmatpush3.msra.mxu1 %v1371_v2  ;;  %1214 = vmatprep.mubr.msk.f32.mxu1 %vm1332_vm2, %v1331_v3 }
 0x859   :  { %1208 = vmatprep.subr.mxu1 %v1331_v3 }
 0x85a   :  { %1209 = vmatpush3.msra.mxu1 %v1381_v5 }
 0x85b   :  { %1210 = vmatprep.subr.mxu1 %v1331_v3 }
 0x85c   :  { %1211 = vmatpush3.msra.mxu1 %v1395_v6 }
 0x85d   :  { %1212 = vmatprep.subr.mxu1 %v1331_v3 }
 0x85e   :  { %1213 = vmatpush3.msra.mxu1 %v1405_v7 }
 0x85f   :  { %1228 = vmatprep.subr.mxu1 %v1331_v3 }
 0x917   :  { %v582_v30 = vpop.f32.mrf.mxu1 }
 0x918   :  { %v586_v31 = vadd.f32 %v582_v30, %v149_v29  ;;  %v164_v29 = vadd.f32 %v1433_v10, %v1514_v4 }
 0x919   :  { %v1194_v32 = vpop.f32.mrf.mxu1 }
 0x91a   :  { %v1079_v33 = vmul.f32 -1.442695, %v586_v31 }
 0x91c   :  { %1269 = vpow2.f32 %v1079_v33 }
 0x91d   :  { %1271 = vtanh.f32 %v586_v31 }
 0x929   :  { %v1270_v34 = vpop.eup %1269 }
 0x92a   :  { %v591_v36 = vadd.f32 1.0, %v1270_v34  ;;  %v1272_v37 = vpop.eup %1271 }
 0x92c   :  { %1273 = vrcp.f32 %v591_v36 }
 0x939   :  { %v1274_v38 = vpop.eup %1273 }
 0x93a   :  { %v594_v39 = vsel %vm1436_vm5, %v1272_v37, %v1274_v38 }
 0x93b   :  { %597 = vrot.lane.b32.xlu1 %v594_v39, %s1333_s3  ;;  %v595_v42 = vmul.f32 %v594_v39, %v500_v24 }
 0x9ad   :  { %v598_v40 = vpop.permute.xlu1 %597 }
 0x9ae   :  { %v600_v41 = vmul.f32 %v598_v40, %v594_v39 }
 0x9b0   :  { %602 = vrot.lane.b32.xlu0 %v600_v41, %s1334_s29 }
 0xa22   :  { %v603_v43 = vpop.permute.xlu0 %602 }
 0xa23   :  { %v605_v44 = vadd.f32 %v603_v43, %v595_v42 }
 0xa25   :  { %1275 = vtanh.f32 %v605_v44 }
 0xa32   :  { %v1276_v45 = vpop.eup %1275 }
 0xa33   :  { %608 = vrot.lane.b32.xlu1 %v1276_v45, %s1333_s3 }
 0xaa5   :  { %v609_v46 = vpop.permute.xlu1 %608 }
 0xaa6   :  { %v611_v47 = vmul.f32 %v609_v46, %v594_v39 }
 0xaa8   :  { %613 = vrot.lane.b32.xlu0 %v611_v47, %s1334_s29 }
 0xb1a   :  { %v1544_v48 = vpop.permute.xlu0 %613 }
 0xb1b   :  { %1204 = vmatmul.mubr.msk.f32.vlgmr.msra.gmra.mxu0 %vm22_vm1, %v1544_v48 }
 0xb1c   :  { %1218 = vmatpush3.msra.mxu0 %v1371_v2  ;;  %1225 = vmatprep.mubr.msk.f32.mxu0 %vm1332_vm2, %v1331_v3 }
 0xb1d   :  { %1219 = vmatprep.subr.mxu0 %v1331_v3 }
 0xb1e   :  { %1220 = vmatpush3.msra.mxu0 %v1381_v5 }
 0xb1f   :  { %1221 = vmatprep.subr.mxu0 %v1331_v3 }
 0xb20   :  { %1222 = vmatpush3.msra.mxu0 %v1395_v6 }
 0xb21   :  { %1223 = vmatprep.subr.mxu0 %v1331_v3 }
 0xb22   :  { %1224 = vmatpush3.msra.mxu0 %v1405_v7 }
 0xbdb   :  { %v687_v50 = vpop.f32.mrf.mxu0 }
 0xbdc   :  { %v691_v51 = vadd.f32 %v687_v50, %v154_v49  ;;  %v169_v49 = vadd.f32 %v1512_v1, %v1433_v10 }
 0xbdd   :  { %v1205_v52 = vpop.f32.mrf.mxu0 }
 0xbde   :  { %v1081_v53 = vmul.f32 -1.442695, %v691_v51 }
 0xbe0   :  { %1277 = vpow2.f32 %v1081_v53 }
 0xbe1   :  { %1279 = vtanh.f32 %v691_v51 }
 0xbed   :  { %v1278_v54 = vpop.eup %1277 }
 0xbee   :  { %v696_v55 = vadd.f32 1.0, %v1278_v54  ;;  %v1280_v56 = vpop.eup %1279 }
 0xbf0   :  { %1281 = vrcp.f32 %v696_v55 }
 0xbfd   :  { %v1282_v57 = vpop.eup %1281 }
 0xbfe   :  { %v699_v58 = vsel %vm1436_vm5, %v1280_v56, %v1282_v57 }
 0xbff   :  { %702 = vrot.lane.b32.xlu1 %v699_v58, %s1333_s3  ;;  %v700_v62 = vmul.f32 %v699_v58, %v605_v44 }
 0xc71   :  { %v703_v59 = vpop.permute.xlu1 %702 }
 0xc72   :  { %v705_v61 = vmul.f32 %v703_v59, %v699_v58 }
 0xc74   :  { %707 = vrot.lane.b32.xlu0 %v705_v61, %s1334_s29 }
 0xce6   :  { %v708_v0 = vpop.permute.xlu0 %707 }
 0xce7   :  { %v710_v8 = vadd.f32 %v708_v0, %v700_v62 }
 0xce9   :  { %1283 = vtanh.f32 %v710_v8 }
 0xcf6   :  { %v1284_v9 = vpop.eup %1283 }
 0xcf7   :  { %713 = vrot.lane.b32.xlu1 %v1284_v9, %s1333_s3 }
 0xd69   :  { %v714_v11 = vpop.permute.xlu1 %713 }
 0xd6a   :  { %v716_v12 = vmul.f32 %v714_v11, %v699_v58  ;;  %v191_v11 = vld [vmem:[#allocation5] sm:$0xff] }
 0xd6c   :  { %718 = vrot.lane.b32.xlu0 %v716_v12, %s1334_s29  ;;  %v301_v12 = vadd.f32 %v1447_v35, %v191_v11 }
 0xdde   :  { %v1565_v13 = vpop.permute.xlu0 %718 }
 0xddf   :  { %1215 = vmatmul.mubr.msk.f32.vlgmr.msra.gmra.mxu1 %vm22_vm1, %v1565_v13 }
 0xde0   :  { %1229 = vmatpush3.msra.mxu1 %v1371_v2  ;;  %1236 = vmatprep.mubr.msk.f32.mxu1 %vm1332_vm2, %v1331_v3 }
 0xde1   :  { %1230 = vmatprep.subr.mxu1 %v1331_v3 }
 0xde2   :  { %1231 = vmatpush3.msra.mxu1 %v1381_v5 }
 0xde3   :  { %1232 = vmatprep.subr.mxu1 %v1331_v3 }
 0xde4   :  { %1233 = vmatpush3.msra.mxu1 %v1395_v6 }
 0xde5   :  { %1234 = vmatprep.subr.mxu1 %v1331_v3 }
 0xde6   :  { %1235 = vmatpush3.msra.mxu1 %v1405_v7 }
 0xe9f   :  { %v792_v15 = vpop.f32.mrf.mxu1 }
 0xea0   :  { %v796_v2 = vadd.f32 %v792_v15, %v159_v14  ;;  %v406_v14 = vadd.f32 %v1494_v60, %v301_v12 }
 0xea1   :  { %v1216_v16 = vpop.f32.mrf.mxu1 }
 0xea2   :  { %v1083_v17 = vmul.f32 -1.442695, %v796_v2  ;;  %v511_v15 = vadd.f32 %v1523_v28, %v406_v14 }
 0xea4   :  { %1285 = vpow2.f32 %v1083_v17 }
 0xea5   :  { %1287 = vtanh.f32 %v796_v2  ;;  %v616_v2 = vadd.f32 %v1544_v48, %v511_v15 }
 0xea7   :  { %v721_v16 = vadd.f32 %v1565_v13, %v616_v2 }
 0xeb1   :  { %v1286_v18 = vpop.eup %1285 }
 0xeb2   :  { %v801_v19 = vadd.f32 1.0, %v1286_v18  ;;  %v1288_v5 = vpop.eup %1287 }
 0xeb4   :  { %1289 = vrcp.f32 %v801_v19 }
 0xec1   :  { %v1290_v20 = vpop.eup %1289 }
 0xec2   :  { %v804_v6 = vsel %vm1436_vm5, %v1288_v5, %v1290_v20 }
 0xec3   :  { %807 = vrot.lane.b32.xlu1 %v804_v6, %s1333_s3  ;;  %v805_v63 = vmul.f32 %v804_v6, %v710_v8 }
 0xf35   :  { %v808_v3 = vpop.permute.xlu1 %807 }
 0xf36   :  { %v810_v7 = vmul.f32 %v808_v3, %v804_v6 }
 0xf38   :  { %812 = vrot.lane.b32.xlu0 %v810_v7, %s1334_s29 }
 0xfaa   :  { %v813_v22 = vpop.permute.xlu0 %812 }
 0xfab   :  { %v815_v23 = vadd.f32 %v813_v22, %v805_v63 }
 0xfad   :  { %1291 = vtanh.f32 %v815_v23 }
 0xfba   :  { %v1292_v24 = vpop.eup %1291 }
 0xfbb   :  { %818 = vrot.lane.b32.xlu1 %v1292_v24, %s1333_s3 }
0x102d   :  { %v819_v25 = vpop.permute.xlu1 %818 }
0x102e   :  { %v821_v26 = vmul.f32 %v819_v25, %v804_v6 }
0x1030   :  { %823 = vrot.lane.b32.xlu0 %v821_v26, %s1334_s29 }
0x10a2   :  { %v1586_v27 = vpop.permute.xlu0 %823 }
0x10a3   :  { %1226 = vmatmul.mubr.msk.f32.vlgmr.msra.gmra.mxu0 %vm22_vm1, %v1586_v27  ;;  %v826_v17 = vadd.f32 %v1586_v27, %v721_v16 }
0x1163   :  { %v897_v30 = vpop.f32.mrf.mxu0 }
0x1164   :  { %v901_v31 = vadd.f32 %v897_v30, %v164_v29 }
0x1165   :  { %v1227_v32 = vpop.f32.mrf.mxu0 }
0x1166   :  { %v1085_v33 = vmul.f32 -1.442695, %v901_v31 }
0x1168   :  { %1293 = vpow2.f32 %v1085_v33 }
0x1169   :  { %1295 = vtanh.f32 %v901_v31 }
0x1175   :  { %v1294_v34 = vpop.eup %1293 }
0x1176   :  { %v906_v36 = vadd.f32 1.0, %v1294_v34  ;;  %v1296_v37 = vpop.eup %1295 }
0x1178   :  { %1297 = vrcp.f32 %v906_v36 }
0x1185   :  { %v1298_v38 = vpop.eup %1297 }
0x1186   :  { %v909_v39 = vsel %vm1436_vm5, %v1296_v37, %v1298_v38 }
0x1187   :  { %912 = vrot.lane.b32.xlu1 %v909_v39, %s1333_s3  ;;  %v910_v4 = vmul.f32 %v909_v39, %v815_v23 }
0x11f9   :  { %v913_v40 = vpop.permute.xlu1 %912 }
0x11fa   :  { %v915_v41 = vmul.f32 %v913_v40, %v909_v39 }
0x11fc   :  { %917 = vrot.lane.b32.xlu0 %v915_v41, %s1334_s29 }
0x126e   :  { %v918_v42 = vpop.permute.xlu0 %917 }
0x126f   :  { %v920_v43 = vadd.f32 %v918_v42, %v910_v4 }
0x1271   :  { %1299 = vtanh.f32 %v920_v43 }
0x127e   :  { %v1300_v44 = vpop.eup %1299 }
0x127f   :  { %923 = vrot.lane.b32.xlu1 %v1300_v44, %s1333_s3 }
0x12f1   :  { %v924_v45 = vpop.permute.xlu1 %923 }
0x12f2   :  { %v926_v46 = vmul.f32 %v924_v45, %v909_v39 }
0x12f4   :  { %928 = vrot.lane.b32.xlu0 %v926_v46, %s1334_s29 }
0x1366   :  { %v929_v47 = vpop.permute.xlu0 %928 }
0x1367   :  { %1237 = vmatmul.mubr.msk.f32.vlgmr.msra.gmra.mxu1 %vm22_vm1, %v929_v47  ;;  %v931_v18 = vadd.f32 %v929_v47, %v826_v17 }
0x1427   :  { %v1002_v50 = vpop.f32.mrf.mxu1 }
0x1428   :  { %v1006_v51 = vadd.f32 %v1002_v50, %v169_v49 }
0x1429   :  { %v1238_v52 = vpop.f32.mrf.mxu1 }
0x142a   :  { %v1087_v53 = vmul.f32 -1.442695, %v1006_v51 }
0x142c   :  { %1301 = vpow2.f32 %v1087_v53 }
0x142d   :  { %1303 = vtanh.f32 %v1006_v51 }
0x1439   :  { %v1302_v54 = vpop.eup %1301 }
0x143a   :  { %v1011_v55 = vadd.f32 1.0, %v1302_v54  ;;  %v1304_v56 = vpop.eup %1303 }
0x143c   :  { %1305 = vrcp.f32 %v1011_v55 }
0x1449   :  { %v1306_v57 = vpop.eup %1305 }
0x144a   :  { %v1014_v58 = vsel %vm1436_vm5, %v1304_v56, %v1306_v57 }
0x144b   :  { %1017 = vrot.lane.b32.xlu1 %v1014_v58, %s1333_s3  ;;  %v1015_v10 = vmul.f32 %v1014_v58, %v920_v43 }
0x14bd   :  { %v1018_v59 = vpop.permute.xlu1 %1017 }
0x14be   :  { %v1020_v61 = vmul.f32 %v1018_v59, %v1014_v58 }
0x14c0   :  { %1022 = vrot.lane.b32.xlu0 %v1020_v61, %s1334_s29 }
0x1532   :  { %v1023_v1 = vpop.permute.xlu0 %1022 }
0x1533   :  { %v1025_v62 = vadd.f32 %v1023_v1, %v1015_v10 }
0x1535   :  { %1307 = vtanh.f32 %v1025_v62 }
0x1542   :  { %v1308_v0 = vpop.eup %1307 }
0x1543   :  { %1028 = vrot.lane.b32.xlu1 %v1308_v0, %s1333_s3 }
0x1547   :  { %1039 = vrot.lane.b32.xlu1 %v1025_v62, %s1335_s0 }
0x15b5   :  { %v1029_v8 = vpop.permute.xlu1 %1028 }
0x15b6   :  { %v1031_v9 = vmul.f32 %v1029_v8, %v1014_v58 }
0x15b8   :  { %1033 = vrot.lane.b32.xlu0 %v1031_v9, %s1334_s29 }
0x15b9   :  { %v1040_v21 = vpop.permute.xlu1 %1039 }
0x15ba   :  { %1042 = vst.msk [vmem:[#allocation4] sm:$0xff] %vm22_vm1, %v1040_v21 }
0x162a   :  { %v1034_v19 = vpop.permute.xlu0 %1033 }
0x162b   :  { %v1036_v5 = vadd.f32 %v1034_v19, %v931_v18  ;;  %1037 = vst.msk [vmem:[#allocation3] sm:$0xff] %vm22_vm1, %v1034_v19 }
0x162d   :  { %1043 = vst.msk [vmem:[#allocation5] sm:$0xff] %vm22_vm1, %v1036_v5  ;;  %v1047_v35 = vmul.f32 0.125, %v1036_v5 }
0x162f   :  { %1048 = vst.msk [vmem:[#allocation6] sm:$0xff] %vm22_vm1, %v1047_v35 }
0x1630   :  { %1320 = shalt.err (!%p1317_p4)
}
0x1631   :  { %1058 = dma.vmem_to_hbm [thread:$0]  %s1056_s17, 128, %s1624_s4, [#allocation7]  }
0x1632   :  { %1329 = dma.done.wait [#allocation7], 128  }
0x1633   :  { %1330 = vsyncadd [#allocation7], 4294967168 }
0x1634   :  { %1062 = vsyncpa [#allocation7], 1 }

</bundles_post_ra>
